<compile_context>
chip_gen: v6e
topology: v6e:2x2x1
jax: 0.10.0
libtpu: 0.0.40
codegen_flags: <defaults>
</compile_context>

<pallas_src>
import math

import jax
import jax.numpy as jnp
from jax import lax
from jax.experimental import pallas as pl
from jax.experimental.pallas import tpu as pltpu

DIVERSITY_FACTOR = 0.6        # multi_classifier_diversity_factor
DIVERSITY_FACTOR_HCM = 0.6    # multi_classifier_diversity_factor_hcm
CE_RATIO = 1.0
HCM_RATIO = 1.0
EPS = 1e-9
LOG_EPS = math.log(EPS)


# ----------------------------------- kernel ---------------------------------------
def _nil_nbod_kernel(x_ref, logw_ref, topk_ref, tgt_ref, out_ref):
    K, TB, C = x_ref.shape
    N = topk_ref.shape[1]
    n_unmasked = float(C - N)            # exactly hcm_N distinct masked classes per row

    log_w = logw_ref[...].astype(jnp.float32)                  # (1, C)
    col = lax.broadcasted_iota(jnp.int32, (TB, C), 1)

    # HCM mask from top-N class indices (target class is always included by the wrapper).
    tk = topk_ref[...]                                         # (TB, N) int32
    mask_b = col == tk[:, 0:1]
    for n in range(1, N):
        mask_b = jnp.logical_or(mask_b, col == tk[:, n:n + 1])
    tgt_b = col == tgt_ref[...]                                 # (TB, C) one-hot bool

    ce_rows = jnp.zeros((TB, 1), jnp.float32)
    if K > 1:
        kl_bal_rows = jnp.zeros((TB, 1), jnp.float32)
        kl_hcm_rows = jnp.zeros((TB, 1), jnp.float32)
        P_bal = jnp.zeros((TB, C), jnp.float32)
        S_bal = jnp.zeros((TB, C), jnp.float32)
        P_hcm = jnp.zeros((TB, C), jnp.float32)
        S_hcm = jnp.zeros((TB, C), jnp.float32)

    for i in range(K):
        x = x_ref[i].astype(jnp.float32) + log_w               # balanced logits (TB, C)

        # ---- single fused max/exp/sum pass (balanced group) ----
        m = jnp.max(x, axis=-1, keepdims=True)                  # (TB, 1)
        xm = x - m
        e = jnp.exp(xm)
        s = jnp.sum(e, axis=-1, keepdims=True)
        log_s = jnp.log(s)
        lse = m + log_s
        tgt_logit = jnp.sum(jnp.where(tgt_b, x, 0.0), axis=-1, keepdims=True)
        ce_rows = ce_rows + CE_RATIO * (lse - tgt_logit)

        # ---- HCM group: h = where(mask, x, 0); reuse e/m/xm (no second full exp) ----
        s_mask = jnp.sum(jnp.where(mask_b, e, 0.0), axis=-1, keepdims=True)
        m_mask = m + jnp.max(jnp.where(mask_b, xm, -1e30), axis=-1, keepdims=True)
        m2 = jnp.maximum(m_mask, 0.0)
        scale = jnp.exp(jnp.minimum(m - m2, 80.0))              # row scalar, clamp = overflow guard
        base = jnp.exp(-m2)                                     # exp(0 - m2), row scalar
        s_h = s_mask * scale + n_unmasked * base
        lse_h = m2 + jnp.log(s_h)
        # target class is always in the mask -> same target logit as the balanced group
        ce_rows = ce_rows + HCM_RATIO * (lse_h - tgt_logit)

        if K > 1:
            # balanced softmax / log-softmax
            r = pl.reciprocal(s, approx=True)
            p = e * r
            log_p = xm - log_s                                  # exact log-softmax
            lpe = jnp.maximum(log_p, LOG_EPS)                   # ~ log(p + 1e-9)
            kl_bal_rows = kl_bal_rows + jnp.sum(
                p * ((K - 1) * log_p + lpe), axis=-1, keepdims=True)
            P_bal = P_bal + p
            S_bal = S_bal + lpe

            # HCM softmax / log-softmax derived from the balanced pass
            r_h = pl.reciprocal(s_h, approx=True)
            p_h = jnp.where(mask_b, e * (scale * r_h), base * r_h)
            log_p_h = jnp.where(mask_b, xm + (m - lse_h), -lse_h)   # exact: h - lse_h
            lpe_h = jnp.maximum(log_p_h, LOG_EPS)
            kl_hcm_rows = kl_hcm_rows + jnp.sum(
                p_h * ((K - 1) * log_p_h + lpe_h), axis=-1, keepdims=True)
            P_hcm = P_hcm + p_h
            S_hcm = S_hcm + lpe_h

    total_rows = ce_rows
    if K > 1:
        cross_bal = jnp.sum(P_bal * S_bal, axis=-1, keepdims=True)
        cross_hcm = jnp.sum(P_hcm * S_hcm, axis=-1, keepdims=True)
        total_rows = (total_rows
                      + (DIVERSITY_FACTOR / (K - 1)) * (kl_bal_rows - cross_bal)
                      + (DIVERSITY_FACTOR_HCM / (K - 1)) * (kl_hcm_rows - cross_hcm))

    # Per-tile partial of B * loss (the /B normalization is applied in the wrapper).
    total = jnp.sum(total_rows)
    out_ref[...] = jnp.full((8, 128), total, dtype=out_ref.dtype)


# ----------------------------------- wrapper ---------------------------------------
def nil_nbod_loss(inputs, targets, num_class_list, hcm_N, *, batch_block=None):
    """
    inputs:  (K, B, C) logits (f32 or bf16; bf16 halves DMA bytes, math stays f32)
    targets: (K, B)    int labels (only targets[0] is used, as in the PyTorch module)
    num_class_list: (C,) per-class counts (bsce_weight)
    """
    K, B, C = inputs.shape
    if B % 8 != 0:
        raise ValueError(f"batch={B} must be a multiple of 8")
    t0 = targets[0].astype(jnp.int32)

    # ---- glue (plain JAX): HCM top-N index selection (scatter + top_k) ----
    class_select = inputs[0].astype(jnp.float32).at[jnp.arange(B), t0].set(999999.0)
    topk_idx = lax.top_k(class_select, hcm_N)[1].astype(jnp.int32)     # (B, hcm_N)

    log_w = jnp.log(num_class_list.astype(jnp.float32)).reshape(1, C)

    # ---- generation-aware batch tile / VMEM budget ----
    try:
        vmem_cap = int(pltpu.get_tpu_info().vmem_capacity_bytes)
    except Exception:
        vmem_cap = 64 * 2**20                      # conservative (v7x) fallback
    budget = int(vmem_cap * 0.65)
    itemsize = jnp.dtype(inputs.dtype).itemsize
    Cl = ((C + 127) // 128) * 128                  # lane-padded width of (., C) VMEM buffers

    def tile_bytes(tb):
        stream = 2 * (K * tb * Cl * itemsize + 2 * tb * 128 * 4)  # double-buffered inputs
        consts = 2 * 8 * Cl * 4 + 2 * 8 * 128 * 4                 # log_w + output tiles
        live = 14 * tb * Cl * 4                                   # P/S accumulators + transients
        return stream + consts + live

    cap = min(batch_block if batch_block is not None else 512, B)
    if B >= 16:
        cap = min(cap, B // 2)                     # >= 2 grid steps (v7x megacore split)
    cap = max(8, (cap // 8) * 8)
    candidates = [t for t in range(8, cap + 1, 8) if B % t == 0]
    TB = candidates[0]
    for t in reversed(candidates):
        if tile_bytes(t) <= budget:
            TB = t
            break
    G = B // TB
    vmem_limit = int(min(vmem_cap * 9 // 10, max(32 * 2**20, 2 * tile_bytes(TB))))

    grid_spec = pltpu.PrefetchScalarGridSpec(
        num_scalar_prefetch=0,
        grid=(G,),
        in_specs=[
            pl.BlockSpec((K, TB, C), lambda b: (0, b, 0)),   # logits tile (unpadded C)
            pl.BlockSpec((1, C), lambda b: (0, 0)),          # log bsce weights
            pl.BlockSpec((TB, hcm_N), lambda b: (b, 0)),     # top-N class indices
            pl.BlockSpec((TB, 1), lambda b: (b, 0)),         # labels
        ],
        out_specs=pl.BlockSpec((8, 128), lambda b: (b, 0)),  # per-tile partial loss
    )

    out = pl.pallas_call(
        _nil_nbod_kernel,
        out_shape=jax.ShapeDtypeStruct((G * 8, 128), jnp.float32),
        grid_spec=grid_spec,
        compiler_params=pltpu.CompilerParams(
            dimension_semantics=("parallel",),     # independent batch tiles
            vmem_limit_bytes=vmem_limit),
    )(inputs, log_w, topk_idx, t0.reshape(B, 1))

    partials = out.reshape(G, 8, 128)[:, 0, 0]     # one scalar per grid step
    return jnp.sum(partials) / B                   # CE 'mean' / KL 'batchmean' normalization


# ------------------------------ pure-JAX reference ----------------------------------
def _reference_loss(inputs, targets, num_class_list, hcm_N):
    K, B, C = inputs.shape
    t0 = targets[0]
    class_select = inputs[0].astype(jnp.float32).at[jnp.arange(B), t0].set(999999.0)
    topk_idx = lax.top_k(class_select, hcm_N)[1]
    mask = jnp.zeros((B, C), jnp.float32).at[jnp.arange(B)[:, None], topk_idx].set(1.0)
    log_w = jnp.log(num_class_list.astype(jnp.float32))[None, :]

    def ce(logits):
        ls = jax.nn.log_softmax(logits, axis=-1)
        return -jnp.mean(ls[jnp.arange(B), t0])

    bal, hcm = [], []
    los_ce = 0.0
    loss_hcm = 0.0
    for i in range(K):
        li = inputs[i].astype(jnp.float32) + log_w
        hi = li * mask
        bal.append(li)
        hcm.append(hi)
        los_ce += ce(li)
        loss_hcm += ce(hi)

    def nbod(lst, factor):
        if K == 1:
            return 0.0
        ps = [jax.nn.softmax(l, axis=-1) for l in lst]
        lps = [jnp.log(p + EPS) for p in ps]
        loss = 0.0
        for i in range(K):
            for j in range(K):
                if i == j:
                    continue
                loss += factor * jnp.sum(ps[j] * (jnp.log(ps[j]) - lps[i])) / B
        return loss / (K - 1)

    return (nbod(bal, DIVERSITY_FACTOR) + nbod(hcm, DIVERSITY_FACTOR_HCM)
            + los_ce * CE_RATIO + loss_hcm * HCM_RATIO)


# ----------------------------------- test ------------------------------------------
def _run_case(key, K, B, C, hcm_N):
    k1, k2 = jax.random.split(key)
    inputs = jax.random.normal(k1, (K, B, C), dtype=jnp.float32)
    targets = jax.random.randint(k2, (K, B), 0, C, dtype=jnp.int32)
    # deterministic synthetic per-class counts (bsce_weight), long-tailed-ish
    num_class_list = (jnp.arange(C, dtype=jnp.float32) + 1.0) * 10.0

    loss = jax.block_until_ready(nil_nbod_loss(inputs, targets, num_class_list, hcm_N))
    ref = jax.block_until_ready(_reference_loss(inputs, targets, num_class_list, hcm_N))
    assert jnp.isfinite(loss), loss
    assert jnp.allclose(loss, ref, rtol=2e-3, atol=2e-3), (loss, ref)


if __name__ == "__main__":
    key0, key1 = jax.random.split(jax.random.PRNGKey(0))
    # cifar10-like: K=2 classifiers, C deliberately not 128-aligned, 2 grid steps
    _run_case(key0, K=2, B=16, C=40, hcm_N=3)
    # K>2 exercises the running-accumulator pairwise-KL algebra
    _run_case(key1, K=3, B=32, C=100, hcm_N=5)
    print("KERNEL_OK")
</pallas_src>

<mosaic_0001>
module attributes {stable_mosaic.version = 11 : i64} {
  func.func @_nil_nbod_kernel(%arg0: i32, %arg1: memref<2x8x40xf32, #tpu.memory_space<vmem>>, %arg2: memref<1x40xf32, #tpu.memory_space<vmem>>, %arg3: memref<8x3xi32, #tpu.memory_space<vmem>>, %arg4: memref<8x1xi32, #tpu.memory_space<vmem>>, %arg5: memref<8x128xf32, #tpu.memory_space<vmem>>) attributes {dimension_semantics = [#tpu.dimension_semantics<parallel>], iteration_bounds = array<i64: 2>, scalar_prefetch = 0 : i64, scratch_operands = 0 : i64, tpu.core_type = #tpu.core_type<tc>, window_params = [{transform_indices = @transform_0, window_bounds = array<i64: 2, 8, 40>}, {pipeline_mode = #tpu.pipeline_mode<synchronous>, transform_indices = @transform_1, window_bounds = array<i64: 1, 40>}, {transform_indices = @transform_2, window_bounds = array<i64: 8, 3>}, {transform_indices = @transform_3, window_bounds = array<i64: 8, 1>}, {transform_indices = @transform_4, window_bounds = array<i64: 8, 128>}]} {
    %c0 = arith.constant 0 : index
    %c0_0 = arith.constant 0 : index
    %0 = vector.load %arg2[%c0, %c0_0] : memref<1x40xf32, #tpu.memory_space<vmem>>, vector<1x40xf32>
    %1 = tpu.iota {dimensions = array<i32: 1>} : vector<8x40xi32>
    %c0_1 = arith.constant 0 : index
    %c0_2 = arith.constant 0 : index
    %2 = vector.load %arg3[%c0_1, %c0_2] : memref<8x3xi32, #tpu.memory_space<vmem>>, vector<8x3xi32>
    %3 = vector.extract_strided_slice %2 {offsets = [0, 0], sizes = [8, 1], strides = [1, 1]} : vector<8x3xi32> to vector<8x1xi32>
    %4 = vector.broadcast %3 : vector<8x1xi32> to vector<8x40xi32>
    %5 = arith.cmpi eq, %1, %4 : vector<8x40xi32>
    %6 = vector.extract_strided_slice %2 {offsets = [0, 1], sizes = [8, 1], strides = [1, 1]} : vector<8x3xi32> to vector<8x1xi32>
    %7 = vector.broadcast %6 : vector<8x1xi32> to vector<8x40xi32>
    %8 = arith.cmpi eq, %1, %7 : vector<8x40xi32>
    %9 = arith.ori %5, %8 : vector<8x40xi1>
    %10 = vector.extract_strided_slice %2 {offsets = [0, 2], sizes = [8, 1], strides = [1, 1]} : vector<8x3xi32> to vector<8x1xi32>
    %11 = vector.broadcast %10 : vector<8x1xi32> to vector<8x40xi32>
    %12 = arith.cmpi eq, %1, %11 : vector<8x40xi32>
    %13 = arith.ori %9, %12 : vector<8x40xi1>
    %c0_3 = arith.constant 0 : index
    %c0_4 = arith.constant 0 : index
    %14 = vector.load %arg4[%c0_3, %c0_4] : memref<8x1xi32, #tpu.memory_space<vmem>>, vector<8x1xi32>
    %15 = vector.broadcast %14 : vector<8x1xi32> to vector<8x40xi32>
    %16 = arith.cmpi eq, %1, %15 : vector<8x40xi32>
    %cst = arith.constant 0.000000e+00 : f32
    %17 = vector.broadcast %cst : f32 to vector<8x1xf32>
    %cst_5 = arith.constant 0.000000e+00 : f32
    %18 = vector.broadcast %cst_5 : f32 to vector<8x1xf32>
    %cst_6 = arith.constant 0.000000e+00 : f32
    %19 = vector.broadcast %cst_6 : f32 to vector<8x1xf32>
    %cst_7 = arith.constant 0.000000e+00 : f32
    %20 = vector.broadcast %cst_7 : f32 to vector<8x40xf32>
    %cst_8 = arith.constant 0.000000e+00 : f32
    %21 = vector.broadcast %cst_8 : f32 to vector<8x40xf32>
    %cst_9 = arith.constant 0.000000e+00 : f32
    %22 = vector.broadcast %cst_9 : f32 to vector<8x40xf32>
    %cst_10 = arith.constant 0.000000e+00 : f32
    %23 = vector.broadcast %cst_10 : f32 to vector<8x40xf32>
    %c0_11 = arith.constant 0 : index
    %c0_12 = arith.constant 0 : index
    %c0_13 = arith.constant 0 : index
    %24 = vector.load %arg1[%c0_11, %c0_12, %c0_13] : memref<2x8x40xf32, #tpu.memory_space<vmem>>, vector<1x8x40xf32>
    %25 = vector.shape_cast %24 : vector<1x8x40xf32> to vector<8x40xf32>
    %26 = vector.broadcast %0 : vector<1x40xf32> to vector<8x40xf32>
    %27 = arith.addf %25, %26 : vector<8x40xf32>
    %cst_14 = arith.constant dense<0xFF800000> : vector<8xf32>
    %28 = vector.multi_reduction <maximumf>, %27, %cst_14 [1] : vector<8x40xf32> to vector<8xf32>
    %29 = vector.shape_cast %28 : vector<8xf32> to vector<8x1xf32>
    %30 = vector.broadcast %29 : vector<8x1xf32> to vector<8x40xf32>
    %31 = arith.subf %27, %30 : vector<8x40xf32>
    %32 = math.exp %31 : vector<8x40xf32>
    %cst_15 = arith.constant dense<0.000000e+00> : vector<8xf32>
    %33 = vector.multi_reduction <add>, %32, %cst_15 [1] : vector<8x40xf32> to vector<8xf32>
    %34 = vector.shape_cast %33 : vector<8xf32> to vector<8x1xf32>
    %35 = math.log %34 : vector<8x1xf32>
    %36 = arith.addf %29, %35 : vector<8x1xf32>
    %cst_16 = arith.constant 0.000000e+00 : f32
    %37 = vector.broadcast %cst_16 : f32 to vector<8x40xf32>
    %38 = arith.select %16, %27, %37 : vector<8x40xi1>, vector<8x40xf32>
    %cst_17 = arith.constant dense<0.000000e+00> : vector<8xf32>
    %39 = vector.multi_reduction <add>, %38, %cst_17 [1] : vector<8x40xf32> to vector<8xf32>
    %40 = vector.shape_cast %39 : vector<8xf32> to vector<8x1xf32>
    %41 = arith.subf %36, %40 : vector<8x1xf32>
    %cst_18 = arith.constant 1.000000e+00 : f32
    %42 = vector.broadcast %cst_18 : f32 to vector<8x1xf32>
    %43 = arith.mulf %42, %41 : vector<8x1xf32>
    %44 = arith.addf %17, %43 : vector<8x1xf32>
    %cst_19 = arith.constant 0.000000e+00 : f32
    %45 = vector.broadcast %cst_19 : f32 to vector<8x40xf32>
    %46 = arith.select %13, %32, %45 : vector<8x40xi1>, vector<8x40xf32>
    %cst_20 = arith.constant dense<0.000000e+00> : vector<8xf32>
    %47 = vector.multi_reduction <add>, %46, %cst_20 [1] : vector<8x40xf32> to vector<8xf32>
    %48 = vector.shape_cast %47 : vector<8xf32> to vector<8x1xf32>
    %cst_21 = arith.constant -1.000000e+30 : f32
    %49 = vector.broadcast %cst_21 : f32 to vector<8x40xf32>
    %50 = arith.select %13, %31, %49 : vector<8x40xi1>, vector<8x40xf32>
    %cst_22 = arith.constant dense<0xFF800000> : vector<8xf32>
    %51 = vector.multi_reduction <maximumf>, %50, %cst_22 [1] : vector<8x40xf32> to vector<8xf32>
    %52 = vector.shape_cast %51 : vector<8xf32> to vector<8x1xf32>
    %53 = arith.addf %29, %52 : vector<8x1xf32>
    %cst_23 = arith.constant 0.000000e+00 : f32
    %54 = vector.broadcast %cst_23 : f32 to vector<8x1xf32>
    %55 = arith.maximumf %53, %54 : vector<8x1xf32>
    %56 = arith.subf %29, %55 : vector<8x1xf32>
    %cst_24 = arith.constant 8.000000e+01 : f32
    %57 = vector.broadcast %cst_24 : f32 to vector<8x1xf32>
    %58 = arith.minimumf %56, %57 : vector<8x1xf32>
    %59 = math.exp %58 : vector<8x1xf32>
    %cst_25 = arith.constant 0.000000e+00 : f32
    %60 = vector.broadcast %cst_25 : f32 to vector<8x1xf32>
    %61 = arith.subf %60, %55 : vector<8x1xf32>
    %62 = math.exp %61 : vector<8x1xf32>
    %63 = arith.mulf %48, %59 : vector<8x1xf32>
    %cst_26 = arith.constant 3.700000e+01 : f32
    %64 = vector.broadcast %cst_26 : f32 to vector<8x1xf32>
    %65 = arith.mulf %64, %62 : vector<8x1xf32>
    %66 = arith.addf %63, %65 : vector<8x1xf32>
    %67 = math.log %66 : vector<8x1xf32>
    %68 = arith.addf %55, %67 : vector<8x1xf32>
    %69 = arith.subf %68, %40 : vector<8x1xf32>
    %cst_27 = arith.constant 1.000000e+00 : f32
    %70 = vector.broadcast %cst_27 : f32 to vector<8x1xf32>
    %71 = arith.mulf %70, %69 : vector<8x1xf32>
    %72 = arith.addf %44, %71 : vector<8x1xf32>
    %73 = tpu.reciprocal %34 {approx = true} : vector<8x1xf32> -> vector<8x1xf32>
    %74 = vector.broadcast %73 : vector<8x1xf32> to vector<8x40xf32>
    %75 = arith.mulf %32, %74 : vector<8x40xf32>
    %76 = vector.broadcast %35 : vector<8x1xf32> to vector<8x40xf32>
    %77 = arith.subf %31, %76 : vector<8x40xf32>
    %cst_28 = arith.constant -20.7232666 : f32
    %78 = vector.broadcast %cst_28 : f32 to vector<8x40xf32>
    %79 = arith.maximumf %77, %78 : vector<8x40xf32>
    %cst_29 = arith.constant 1.000000e+00 : f32
    %80 = vector.broadcast %cst_29 : f32 to vector<8x40xf32>
    %81 = arith.mulf %80, %77 : vector<8x40xf32>
    %82 = arith.addf %81, %79 : vector<8x40xf32>
    %83 = arith.mulf %75, %82 : vector<8x40xf32>
    %cst_30 = arith.constant dense<0.000000e+00> : vector<8xf32>
    %84 = vector.multi_reduction <add>, %83, %cst_30 [1] : vector<8x40xf32> to vector<8xf32>
    %85 = vector.shape_cast %84 : vector<8xf32> to vector<8x1xf32>
    %86 = arith.addf %18, %85 : vector<8x1xf32>
    %87 = arith.addf %20, %75 : vector<8x40xf32>
    %88 = arith.addf %21, %79 : vector<8x40xf32>
    %89 = tpu.reciprocal %66 {approx = true} : vector<8x1xf32> -> vector<8x1xf32>
    %90 = arith.mulf %59, %89 : vector<8x1xf32>
    %91 = vector.broadcast %90 : vector<8x1xf32> to vector<8x40xf32>
    %92 = arith.mulf %32, %91 : vector<8x40xf32>
    %93 = arith.mulf %62, %89 : vector<8x1xf32>
    %94 = vector.shape_cast %93 : vector<8x1xf32> to vector<8x1xf32>
    %95 = vector.broadcast %94 : vector<8x1xf32> to vector<8x40xf32>
    %96 = arith.select %13, %92, %95 : vector<8x40xi1>, vector<8x40xf32>
    %97 = arith.subf %29, %68 : vector<8x1xf32>
    %98 = vector.broadcast %97 : vector<8x1xf32> to vector<8x40xf32>
    %99 = arith.addf %31, %98 : vector<8x40xf32>
    %cst_31 = arith.constant 0.000000e+00 : f32
    %100 = vector.broadcast %cst_31 : f32 to vector<8x1xf32>
    %101 = arith.subf %100, %68 : vector<8x1xf32>
    %102 = vector.shape_cast %101 : vector<8x1xf32> to vector<8x1xf32>
    %103 = vector.broadcast %102 : vector<8x1xf32> to vector<8x40xf32>
    %104 = arith.select %13, %99, %103 : vector<8x40xi1>, vector<8x40xf32>
    %cst_32 = arith.constant -20.7232666 : f32
    %105 = vector.broadcast %cst_32 : f32 to vector<8x40xf32>
    %106 = arith.maximumf %104, %105 : vector<8x40xf32>
    %cst_33 = arith.constant 1.000000e+00 : f32
    %107 = vector.broadcast %cst_33 : f32 to vector<8x40xf32>
    %108 = arith.mulf %107, %104 : vector<8x40xf32>
    %109 = arith.addf %108, %106 : vector<8x40xf32>
    %110 = arith.mulf %96, %109 : vector<8x40xf32>
    %cst_34 = arith.constant dense<0.000000e+00> : vector<8xf32>
    %111 = vector.multi_reduction <add>, %110, %cst_34 [1] : vector<8x40xf32> to vector<8xf32>
    %112 = vector.shape_cast %111 : vector<8xf32> to vector<8x1xf32>
    %113 = arith.addf %19, %112 : vector<8x1xf32>
    %114 = arith.addf %22, %96 : vector<8x40xf32>
    %115 = arith.addf %23, %106 : vector<8x40xf32>
    %c1 = arith.constant 1 : index
    %c0_35 = arith.constant 0 : index
    %c0_36 = arith.constant 0 : index
    %116 = vector.load %arg1[%c1, %c0_35, %c0_36] : memref<2x8x40xf32, #tpu.memory_space<vmem>>, vector<1x8x40xf32>
    %117 = vector.shape_cast %116 : vector<1x8x40xf32> to vector<8x40xf32>
    %118 = vector.broadcast %0 : vector<1x40xf32> to vector<8x40xf32>
    %119 = arith.addf %117, %118 : vector<8x40xf32>
    %cst_37 = arith.constant dense<0xFF800000> : vector<8xf32>
    %120 = vector.multi_reduction <maximumf>, %119, %cst_37 [1] : vector<8x40xf32> to vector<8xf32>
    %121 = vector.shape_cast %120 : vector<8xf32> to vector<8x1xf32>
    %122 = vector.broadcast %121 : vector<8x1xf32> to vector<8x40xf32>
    %123 = arith.subf %119, %122 : vector<8x40xf32>
    %124 = math.exp %123 : vector<8x40xf32>
    %cst_38 = arith.constant dense<0.000000e+00> : vector<8xf32>
    %125 = vector.multi_reduction <add>, %124, %cst_38 [1] : vector<8x40xf32> to vector<8xf32>
    %126 = vector.shape_cast %125 : vector<8xf32> to vector<8x1xf32>
    %127 = math.log %126 : vector<8x1xf32>
    %128 = arith.addf %121, %127 : vector<8x1xf32>
    %cst_39 = arith.constant 0.000000e+00 : f32
    %129 = vector.broadcast %cst_39 : f32 to vector<8x40xf32>
    %130 = arith.select %16, %119, %129 : vector<8x40xi1>, vector<8x40xf32>
    %cst_40 = arith.constant dense<0.000000e+00> : vector<8xf32>
    %131 = vector.multi_reduction <add>, %130, %cst_40 [1] : vector<8x40xf32> to vector<8xf32>
    %132 = vector.shape_cast %131 : vector<8xf32> to vector<8x1xf32>
    %133 = arith.subf %128, %132 : vector<8x1xf32>
    %cst_41 = arith.constant 1.000000e+00 : f32
    %134 = vector.broadcast %cst_41 : f32 to vector<8x1xf32>
    %135 = arith.mulf %134, %133 : vector<8x1xf32>
    %136 = arith.addf %72, %135 : vector<8x1xf32>
    %cst_42 = arith.constant 0.000000e+00 : f32
    %137 = vector.broadcast %cst_42 : f32 to vector<8x40xf32>
    %138 = arith.select %13, %124, %137 : vector<8x40xi1>, vector<8x40xf32>
    %cst_43 = arith.constant dense<0.000000e+00> : vector<8xf32>
    %139 = vector.multi_reduction <add>, %138, %cst_43 [1] : vector<8x40xf32> to vector<8xf32>
    %140 = vector.shape_cast %139 : vector<8xf32> to vector<8x1xf32>
    %cst_44 = arith.constant -1.000000e+30 : f32
    %141 = vector.broadcast %cst_44 : f32 to vector<8x40xf32>
    %142 = arith.select %13, %123, %141 : vector<8x40xi1>, vector<8x40xf32>
    %cst_45 = arith.constant dense<0xFF800000> : vector<8xf32>
    %143 = vector.multi_reduction <maximumf>, %142, %cst_45 [1] : vector<8x40xf32> to vector<8xf32>
    %144 = vector.shape_cast %143 : vector<8xf32> to vector<8x1xf32>
    %145 = arith.addf %121, %144 : vector<8x1xf32>
    %cst_46 = arith.constant 0.000000e+00 : f32
    %146 = vector.broadcast %cst_46 : f32 to vector<8x1xf32>
    %147 = arith.maximumf %145, %146 : vector<8x1xf32>
    %148 = arith.subf %121, %147 : vector<8x1xf32>
    %cst_47 = arith.constant 8.000000e+01 : f32
    %149 = vector.broadcast %cst_47 : f32 to vector<8x1xf32>
    %150 = arith.minimumf %148, %149 : vector<8x1xf32>
    %151 = math.exp %150 : vector<8x1xf32>
    %cst_48 = arith.constant 0.000000e+00 : f32
    %152 = vector.broadcast %cst_48 : f32 to vector<8x1xf32>
    %153 = arith.subf %152, %147 : vector<8x1xf32>
    %154 = math.exp %153 : vector<8x1xf32>
    %155 = arith.mulf %140, %151 : vector<8x1xf32>
    %cst_49 = arith.constant 3.700000e+01 : f32
    %156 = vector.broadcast %cst_49 : f32 to vector<8x1xf32>
    %157 = arith.mulf %156, %154 : vector<8x1xf32>
    %158 = arith.addf %155, %157 : vector<8x1xf32>
    %159 = math.log %158 : vector<8x1xf32>
    %160 = arith.addf %147, %159 : vector<8x1xf32>
    %161 = arith.subf %160, %132 : vector<8x1xf32>
    %cst_50 = arith.constant 1.000000e+00 : f32
    %162 = vector.broadcast %cst_50 : f32 to vector<8x1xf32>
    %163 = arith.mulf %162, %161 : vector<8x1xf32>
    %164 = arith.addf %136, %163 : vector<8x1xf32>
    %165 = tpu.reciprocal %126 {approx = true} : vector<8x1xf32> -> vector<8x1xf32>
    %166 = vector.broadcast %165 : vector<8x1xf32> to vector<8x40xf32>
    %167 = arith.mulf %124, %166 : vector<8x40xf32>
    %168 = vector.broadcast %127 : vector<8x1xf32> to vector<8x40xf32>
    %169 = arith.subf %123, %168 : vector<8x40xf32>
    %cst_51 = arith.constant -20.7232666 : f32
    %170 = vector.broadcast %cst_51 : f32 to vector<8x40xf32>
    %171 = arith.maximumf %169, %170 : vector<8x40xf32>
    %cst_52 = arith.constant 1.000000e+00 : f32
    %172 = vector.broadcast %cst_52 : f32 to vector<8x40xf32>
    %173 = arith.mulf %172, %169 : vector<8x40xf32>
    %174 = arith.addf %173, %171 : vector<8x40xf32>
    %175 = arith.mulf %167, %174 : vector<8x40xf32>
    %cst_53 = arith.constant dense<0.000000e+00> : vector<8xf32>
    %176 = vector.multi_reduction <add>, %175, %cst_53 [1] : vector<8x40xf32> to vector<8xf32>
    %177 = vector.shape_cast %176 : vector<8xf32> to vector<8x1xf32>
    %178 = arith.addf %86, %177 : vector<8x1xf32>
    %179 = arith.addf %87, %167 : vector<8x40xf32>
    %180 = arith.addf %88, %171 : vector<8x40xf32>
    %181 = tpu.reciprocal %158 {approx = true} : vector<8x1xf32> -> vector<8x1xf32>
    %182 = arith.mulf %151, %181 : vector<8x1xf32>
    %183 = vector.broadcast %182 : vector<8x1xf32> to vector<8x40xf32>
    %184 = arith.mulf %124, %183 : vector<8x40xf32>
    %185 = arith.mulf %154, %181 : vector<8x1xf32>
    %186 = vector.shape_cast %185 : vector<8x1xf32> to vector<8x1xf32>
    %187 = vector.broadcast %186 : vector<8x1xf32> to vector<8x40xf32>
    %188 = arith.select %13, %184, %187 : vector<8x40xi1>, vector<8x40xf32>
    %189 = arith.subf %121, %160 : vector<8x1xf32>
    %190 = vector.broadcast %189 : vector<8x1xf32> to vector<8x40xf32>
    %191 = arith.addf %123, %190 : vector<8x40xf32>
    %cst_54 = arith.constant 0.000000e+00 : f32
    %192 = vector.broadcast %cst_54 : f32 to vector<8x1xf32>
    %193 = arith.subf %192, %160 : vector<8x1xf32>
    %194 = vector.shape_cast %193 : vector<8x1xf32> to vector<8x1xf32>
    %195 = vector.broadcast %194 : vector<8x1xf32> to vector<8x40xf32>
    %196 = arith.select %13, %191, %195 : vector<8x40xi1>, vector<8x40xf32>
    %cst_55 = arith.constant -20.7232666 : f32
    %197 = vector.broadcast %cst_55 : f32 to vector<8x40xf32>
    %198 = arith.maximumf %196, %197 : vector<8x40xf32>
    %cst_56 = arith.constant 1.000000e+00 : f32
    %199 = vector.broadcast %cst_56 : f32 to vector<8x40xf32>
    %200 = arith.mulf %199, %196 : vector<8x40xf32>
    %201 = arith.addf %200, %198 : vector<8x40xf32>
    %202 = arith.mulf %188, %201 : vector<8x40xf32>
    %cst_57 = arith.constant dense<0.000000e+00> : vector<8xf32>
    %203 = vector.multi_reduction <add>, %202, %cst_57 [1] : vector<8x40xf32> to vector<8xf32>
    %204 = vector.shape_cast %203 : vector<8xf32> to vector<8x1xf32>
    %205 = arith.addf %113, %204 : vector<8x1xf32>
    %206 = arith.addf %114, %188 : vector<8x40xf32>
    %207 = arith.addf %115, %198 : vector<8x40xf32>
    %208 = arith.mulf %179, %180 : vector<8x40xf32>
    %cst_58 = arith.constant dense<0.000000e+00> : vector<8xf32>
    %209 = vector.multi_reduction <add>, %208, %cst_58 [1] : vector<8x40xf32> to vector<8xf32>
    %210 = vector.shape_cast %209 : vector<8xf32> to vector<8x1xf32>
    %211 = arith.mulf %206, %207 : vector<8x40xf32>
    %cst_59 = arith.constant dense<0.000000e+00> : vector<8xf32>
    %212 = vector.multi_reduction <add>, %211, %cst_59 [1] : vector<8x40xf32> to vector<8xf32>
    %213 = vector.shape_cast %212 : vector<8xf32> to vector<8x1xf32>
    %214 = arith.subf %178, %210 : vector<8x1xf32>
    %cst_60 = arith.constant 6.000000e-01 : f32
    %215 = vector.broadcast %cst_60 : f32 to vector<8x1xf32>
    %216 = arith.mulf %215, %214 : vector<8x1xf32>
    %217 = arith.addf %164, %216 : vector<8x1xf32>
    %218 = arith.subf %205, %213 : vector<8x1xf32>
    %cst_61 = arith.constant 6.000000e-01 : f32
    %219 = vector.broadcast %cst_61 : f32 to vector<8x1xf32>
    %220 = arith.mulf %219, %218 : vector<8x1xf32>
    %221 = arith.addf %217, %220 : vector<8x1xf32>
    %222 = vector.shape_cast %221 : vector<8x1xf32> to vector<1x8x1xf32>
    %cst_62 = arith.constant dense<0.000000e+00> : vector<1xf32>
    %223 = vector.multi_reduction <add>, %222, %cst_62 [1, 2] : vector<1x8x1xf32> to vector<1xf32>
    %224 = vector.shape_cast %223 : vector<1xf32> to vector<1x1x1xf32>
    %225 = vector.extract %224[0, 0, 0] : f32 from vector<1x1x1xf32>
    %226 = vector.broadcast %225 : f32 to vector<8x128xf32>
    %c0_63 = arith.constant 0 : index
    %c0_64 = arith.constant 0 : index
    %227 = vector.load %arg5[%c0_63, %c0_64] : memref<8x128xf32, #tpu.memory_space<vmem>>, vector<8x128xf32>
    tpu.vector_store %arg5[%c0_63, %c0_64], %226 {strides = array<i32>} : memref<8x128xf32, #tpu.memory_space<vmem>>, vector<8x128xf32>,
    return
  }
  func.func @transform_0(%arg0: i32) -> (i32, i32, i32) {
    %c0_i32 = arith.constant 0 : i32
    %c0_i32_0 = arith.constant 0 : i32
    %c0_i32_1 = arith.constant 0 : i32
    return %c0_i32, %arg0, %c0_i32_0 : i32, i32, i32
  }
  func.func @transform_1(%arg0: i32) -> (i32, i32) {
    %c0_i32 = arith.constant 0 : i32
    %c0_i32_0 = arith.constant 0 : i32
    %c0_i32_1 = arith.constant 0 : i32
    return %c0_i32, %c0_i32_0 : i32, i32
  }
  func.func @transform_2(%arg0: i32) -> (i32, i32) {
    %c0_i32 = arith.constant 0 : i32
    %c0_i32_0 = arith.constant 0 : i32
    return %arg0, %c0_i32 : i32, i32
  }
  func.func @transform_3(%arg0: i32) -> (i32, i32) {
    %c0_i32 = arith.constant 0 : i32
    %c0_i32_0 = arith.constant 0 : i32
    return %arg0, %c0_i32 : i32, i32
  }
  func.func @transform_4(%arg0: i32) -> (i32, i32) {
    %c0_i32 = arith.constant 0 : i32
    %c0_i32_0 = arith.constant 0 : i32
    return %arg0, %c0_i32 : i32, i32
  }
}

</mosaic_0001>

<bundles_post_ra>
// kernel: tpu_custom_call.1
= control target key start
LH: loop header
LB: loop body
LE: loop exit
PB: predicated region body
PF: predicated region fallthrough
CT: control target
= control target key end

     0   :  { %9 = vsyncpa [#allocation4], 0  ;;  %s997_s0 = inlined_call_operand.vmem [shape: f32[2,16,40], index: 0, kind: input, shape index: {}]   ;;  %s998_s1 = inlined_call_operand.vmem [shape: f32[1,40], index: 1, kind: input, shape index: {}]   ;;  %s999_s2 = inlined_call_operand.vmem [shape: s32[16,3], index: 2, kind: input, shape index: {}]   ;;  %s1000_s3 = inlined_call_operand.vmem [shape: s32[16,1], index: 3, kind: input, shape index: {}]   ;;  %s1001_s4 = inlined_call_operand.hbm [shape: f32[16,128], index: 4, kind: output, shape index: {}]  }
   0x1   :  { %11 = vsyncpa [#allocation4 + $0x1], 0  ;;  %s764_s15 = smov 0   ;;  %s766_s16 = smov 0  }
   0x2   :  { %s768_s17 = smov 0   ;;  %s770_s18 = smov 0  }
   0x3 LB: > { %s785_s19 = sadd.s32 4294967295, %s733_s18   ;;  %s580_s20 = sadd.s32 4294967294, %s733_s18   ;;  %s733_s18 = sphi %s770_s18, %s1011_s18   ;;  %s729_s17 = sphi %s768_s17, %s1010_s17   ;;  %s725_s16 = sphi %s766_s16, %s1009_s16   ;;  %s721_s15 = sphi %s764_s15, %s1008_s15  }
   0x4   : > { %s789_s21 = sadd.s32 1, %s733_s18   ;;  %s24_s22 = sadd.s32 1, %s729_s17 }
   0x5   : > { %s21_s23 = ssub.s32 %s733_s18, %s789_s21  ;;  %p31_p0 = scmp.ne.s32.totalorder %s729_s17, %s725_s16 }
   0x6   : > { %p22_p1 = scmp.eq.s32.totalorder %s21_s23, 0  ;;  %p32_p2 = scmp.eq.s32.totalorder %s733_s18, 0 }
   0x7   : > { %p134_p3 = scmp.eq.s32.totalorder %s785_s19, 1  ;;  %p139_p4 = scmp.ne.s32.totalorder %s725_s16, %s721_s15 }
   0x8   : > { %s801_s24 = scalar_select %p22_p1, %s729_s17, %s24_s22  }
   0x9   : > { %p33_p5 = por %p32_p2, %p31_p0  ;;  %p803_p6 = por %p134_p3, %p31_p0 }
   0xa   : > { %p140_p7 = scmp.eq.s32.totalorder %s580_s20, 1  ;;  %p1002_p9 = scmp.ge.s32.totalorder %s733_s18, 2 }
   0xc   : > { %p807_p8 = por %p140_p7, %p139_p4  ;;  %159 = sbr.rel (%p1002_p9) target bundleno = 22 (0x16), region = 20 }
  0x11   : > { %162 = sbr.rel (!%p33_p5) target bundleno = 22 (0x16), region = 24  ;;  %s164_s27 = sand.u32 (%p33_p5), 1, %s729_s17  }
  0x12   : > { %s584_s28 = sshll.u32 (%p33_p5), %s733_s18, 3  ;;  %s583_s29 = sshll.u32 (%p33_p5), %s164_s27, 4 }
  0x13   : > { %s168_s6 = scalar_lea.vmem (%p33_p5), %s997_s0, %s584_s28  ;;  %s166_s7 = scalar_lea.vmem (%p33_p5), [#allocation2], %s583_s29 }
  0x14   : > { %v199_v0 = vld [vmem:[%s168_s6] sm:$0xff] (%p33_p5)  ;;  %v201_v1 = vld [vmem:[%s168_s6 + $0x10] sm:$0xff] (%p33_p5) }
  0x15   : > { %200 = vst [vmem:[%s166_s7] sm:$0xff] (%p33_p5), %v199_v0  ;;  %202 = vst [vmem:[%s166_s7 + $0x8] sm:$0xff] (%p33_p5), %v201_v1 }
  0x16 PF: > { %p585_p10 = scmp.ge.s32.totalorder %s733_s18, 1  ;;  %p221_p11 = scmp.lt.s32.totalorder %s733_s18, 3 }
  0x18   : > { %p222_p12 = pnand %p585_p10, %p221_p11 }
  0x19   : > { %s822_s8 = sand.u32 (!%p222_p12), 1, %s725_s16   ;;  %p261_p13 = scmp.lt.s32.totalorder (!%p222_p12), %s785_s19, 1 }
  0x1a   : > { %225 = sbr.rel (%p222_p12) target bundleno = 753 (0x2f1), region = 70  ;;  %s586_s9 = sshll.u32 (!%p222_p12), %s822_s8, 4 }
  0x1b   : > { %s230_s12 = scalar_lea.vmem (!%p222_p12), [#allocation2], %s586_s9  ;;  %s587_s30 = sshll.u32 (!%p222_p12), %s822_s8, 3 }
  0x1c   : > { %s260_s5 = scalar_lea.vmem (!%p222_p12), [#allocation3], %s587_s30  ;;  %s593_s7 = sshll.u32 (!%p222_p12), %s785_s19, 7 }
  0x1d   : > { %s491_s6 = sshll.u32 (!%p222_p12), %s260_s5, 4  ;;  %s738_s20 = smov (!%p222_p12), [#allocation3]   ;;  %s957_s6 = int_to_ptr.vmem [resolvable:$true] %s491_s6 }
  0x1f   : > { %v590_v2 = vld [vmem:[%s998_s1] ss:$0 sm:$0xff]  ;;  %v735_v3 = vmov 0   ;;  %v736_v4 = vmov 2   ;;  %vm300_vm0 = vcmask 326656   ;;  %v591_v6 = vld [vmem:[%s230_s12 + $0x8] sm:$0xff]  ;;  %v270_v16 = vlaneseq }
  0x20   : > { %640 = vset.pattern.permute.xlu1 %v735_v3  ;;  %642 = vset.pattern.permute.xlu0 %v736_v4  ;;  %v292_v5 = vld [vmem:[%s230_s12] sm:$0xff]  ;;  %s830_s13 = scalar_select %p261_p13, %s785_s19, 1  ;;  %v834_v8 = vadd.f32 %v591_v6, %v590_v2  ;;  %v737_v12 = vmov 1   ;;  %vm464_vm7 = vcmask 7168  }
  0x21   : > { %v832_v7 = vadd.f32 %v590_v2, %v292_v5  ;;  %v859_v20 = vand.u32 127, %v270_v16  ;;  %s489_s12 = scalar_lea.hbm %s1001_s4, %s593_s7  ;;  %s677_s19 = sshll.u32 %s738_s20, 4  ;;  %s678_s19 = int_to_ptr.vmem [resolvable:$false] %s677_s19 }
  0x22   : > { %s588_s14 = sshll.u32 %s830_s13, 3  ;;  %v377_v11 = vsel %vm300_vm0, %v834_v8, -inf  ;;  %s478_s13 = scalar_lea.sflag [#allocation4], %s822_s8 }
  0x23   : > { %v301_v9 = vsel %vm300_vm0, %v832_v7, -inf  ;;  %s264_s23 = scalar_lea.vmem %s999_s2, %s588_s14  ;;  %s268_s29 = scalar_lea.vmem %s1000_s3, %s588_s14 }
  0x24   : > { %302 = vmax.xlane.f32.xlu0 %v301_v9  ;;  %v272_v10 = vld [vmem:[%s264_s23] sm:$0xff]  ;;  %s673_s14 = scalar_lea.vmem %s957_s6, 128  ;;  %s679_s22 = scalar_lea.vmem %s678_s19, 256 }
  0x25   : > { %274 = vperm.xlu1 %640, %v272_v10   ;;  %v287_v37 = vld [vmem:[%s268_s29] sm:$0xff]  ;;  %p674_p0 = scmp.ne.s32.totalorder %s957_s6, %s673_s14  ;;  %p680_p3 = scmp.lt.s32.totalorder %s957_s6, %s678_s19 }
  0x26   : > { %p681_p4 = scmp.lt.s32.totalorder %s679_s22, %s673_s14 }
  0x27   : > { %p675_p1 = pnand %p674_p0, %p803_p6 }
  0x28   : > { %378 = vmax.xlane.f32.xlu0 %v377_v11  ;;  %p682_p5 = por %p681_p4, %p680_p3 }
  0x29   : > { %641 = vset.pattern.permute.xlu1 %v737_v12  ;;  %p676_p2 = pneg %p675_p1 }
  0x2a   : > { %278 = vperm.xlu1 %641, %v272_v10  }
  0x2b   : > { %p683_p7 = pnand %p682_p5, %p676_p2 }
  0x2e   : > { %643 = vset.pattern.permute.xlu1 %v735_v3 }
  0x3e   : > { %283 = vperm.xlu0 %642, %v272_v10  }
  0x42   : > { %644 = vset.pattern.permute.xlu0 %v735_v3 }
  0xa0   : > { %v275_v15 = vpop.permute.xlu1 %274 }
  0xa1   : > { %vm276_vm1 = vcmp.eq.s32.totalorder %v859_v20, %v275_v15 }
  0xa5   : > { %v279_v22 = vpop.permute.xlu1 %278 }
  0xa6   : > { %vm280_vm2 = vcmp.eq.s32.totalorder %v859_v20, %v279_v22 }
  0xa7   : > { %vm281_vm3 = vmor %vm276_vm1, %vm280_vm2 }
  0xad   : > { %v846_v13 = vpop.xlane.xlu0 %302 }
  0xae   : > { %v850_v14 = vsub.f32 %v832_v7, %v846_v13 }
  0xb0   : > { %v305_v17 = vmul.f32 1.442695, %v850_v14 }
  0xb1   : > { %v853_v18 = vpop.xlane.xlu0 %378 }
  0xb2   : > { %645 = vpow2.f32 %v305_v17  ;;  %v857_v19 = vsub.f32 %v834_v8, %v853_v18 }
  0xb4   : > { %v381_v21 = vmul.f32 1.442695, %v857_v19 }
  0xb6   : > { %647 = vpow2.f32 %v381_v21 }
  0xb9   : > { %v284_v23 = vpop.permute.xlu0 %283 }
  0xba   : > { %vm285_vm4 = vcmp.eq.s32.totalorder %v859_v20, %v284_v23 }
  0xbb   : > { %vm865_vm5 = vmor %vm281_vm3, %vm285_vm4 }
  0xbc   : > { %v323_v25 = vsel %vm865_vm5, %v850_v14, -1e+30  ;;  %v399_v27 = vsel %vm865_vm5, %v857_v19, -1e+30 }
  0xbd   : > { %v324_v26 = vsel %vm300_vm0, %v323_v25, -inf  ;;  %v400_v29 = vsel %vm300_vm0, %v399_v27, -inf }
  0xbe   : > { %325 = vmax.xlane.f32.xlu1 %v324_v26 }
  0xbf   : > { %v876_v28 = vpop.eup %645 }
  0xc0   : > { %v319_v30 = vsel %vm865_vm5, %v876_v28, 0.0  ;;  %v307_v35 = vsel %vm300_vm0, %v876_v28, 0.0 }
  0xc1   : > { %v320_v34 = vsel %vm300_vm0, %v319_v30, 0.0 }
  0xc2   : > { %401 = vmax.xlane.f32.xlu1 %v400_v29 }
  0xc3   : > { %v882_v31 = vpop.eup %647 }
  0xc4   : > { %v395_v32 = vsel %vm865_vm5, %v882_v31, 0.0  ;;  %v383_v36 = vsel %vm300_vm0, %v882_v31, 0.0 }
  0xc5   : > { %v396_v33 = vsel %vm300_vm0, %v395_v32, 0.0 }
  0xc6   : > { %397 = vadd.xlane.f32.xlu0 %v396_v33  ;;  %321 = vadd.xlane.f32.xlu1 %v320_v34 }
  0xca   : > { %308 = vadd.xlane.f32.xlu1 %v307_v35 }
  0xce   : > { %384 = vadd.xlane.f32.xlu1 %v383_v36 }
  0xdf   : > { %289 = vperm.xlu1 %643, %v287_v37  }
 0x147   : > { %v326_v38 = vpop.xlane.xlu1 %325 }
 0x148   : > { %v327_v39 = vadd.f32 %v326_v38, %v846_v13 }
 0x14a   : > { %v899_v40 = vmax.f32 %v327_v39, 0.0 }
 0x14b   : > { %v402_v41 = vpop.xlane.xlu1 %401 }
 0x14c   : > { %v329_v42 = vsub.f32 %v846_v13, %v899_v40  ;;  %v333_v43 = vsub.f32 0.0, %v899_v40  ;;  %v403_v44 = vadd.f32 %v402_v41, %v853_v18 }
 0x14e   : > { %v330_v45 = vmin.f32 %v329_v42, 80.0  ;;  %v334_v46 = vmul.f32 1.442695, %v333_v43  ;;  %v905_v47 = vmax.f32 %v403_v44, 0.0 }
 0x14f   : > { %v322_v48 = vpop.xlane.xlu1 %321  ;;  %v398_v6 = vpop.xlane.xlu0 %397 }
 0x150   : > { %v331_v49 = vmul.f32 1.442695, %v330_v45  ;;  %649 = vpow2.f32 %v334_v46  ;;  %v405_v50 = vsub.f32 %v853_v18, %v905_v47  ;;  %v409_v51 = vsub.f32 0.0, %v905_v47 }
 0x152   : > { %651 = vpow2.f32 %v331_v49  ;;  %v406_v52 = vmin.f32 %v405_v50, 80.0  ;;  %v410_v53 = vmul.f32 1.442695, %v409_v51 }
 0x153   : > { %v309_v54 = vpop.xlane.xlu1 %308 }
 0x154   : > { %v407_v55 = vmul.f32 1.442695, %v406_v52  ;;  %653 = vpow2.f32 %v410_v53 }
 0x155   : > { %655 = vlog2.f32 %v309_v54 }
 0x156   : > { %657 = vpow2.f32 %v407_v55 }
 0x157   : > { %v385_v56 = vpop.xlane.xlu1 %384 }
 0x158   : > { %659 = vlog2.f32 %v385_v56 }
 0x159   : > { %661 = vrcp.f32 %v309_v54 }
 0x15a   : > { %663 = vrcp.f32 %v385_v56 }
 0x15b   : > { %v290_v57 = vpop.permute.xlu1 %289 }
 0x15c   : > { %vm291_vm6 = vcmp.eq.s32.totalorder %v859_v20, %v290_v57 }
 0x15d   : > { %v911_v58 = vpop.eup %649  ;;  %v389_v59 = vsel %vm291_vm6, %v834_v8, 0.0  ;;  %v313_v60 = vsel %vm291_vm6, %v832_v7, 0.0 }
 0x15e   : > { %v390_v61 = vsel %vm300_vm0, %v389_v59, 0.0  ;;  %v314_v62 = vsel %vm300_vm0, %v313_v60, 0.0  ;;  %v337_v0 = vmul.f32 37.0, %v911_v58 }
 0x15f   : > { %v652_v63 = vpop.eup %651  ;;  %391 = vadd.xlane.f32.xlu0 %v390_v61  ;;  %315 = vadd.xlane.f32.xlu1 %v314_v62 }
 0x160   : > { %v336_v1 = vmul.f32 %v652_v63, %v322_v48 }
 0x161   : > { %v654_v2 = vpop.eup %653 }
 0x162   : > { %v656_v3 = vpop.eup %655  ;;  %v338_v4 = vadd.f32 %v337_v0, %v336_v1  ;;  %v413_v10 = vmul.f32 37.0, %v654_v2 }
 0x163   : > { %v658_v5 = vpop.eup %657  ;;  %v918_v9 = vmul.f32 0.6931472, %v656_v3 }
 0x164   : > { %v412_v8 = vmul.f32 %v658_v5, %v398_v6  ;;  %665 = vlog2.f32 %v338_v4 }
 0x165   : > { %v660_v7 = vpop.eup %659  ;;  %v346_v11 = vsub.f32 %v850_v14, %v918_v9  ;;  %667 = vrcp.f32 %v338_v4  ;;  %v312_v6 = vadd.f32 %v918_v9, %v846_v13 }
 0x166   : > { %v662_v12 = vpop.eup %661  ;;  %v414_v15 = vadd.f32 %v413_v10, %v412_v8  ;;  %v922_v16 = vmul.f32 0.6931472, %v660_v7 }
 0x167   : > { %v347_v17 = vmax.f32 %v346_v11, -20.723267  ;;  %v664_v20 = vpop.eup %663  ;;  %v345_v22 = vmul.f32 %v662_v12, %v876_v28 }
 0x168   : > { %669 = vlog2.f32 %v414_v15  ;;  %v422_v21 = vsub.f32 %v857_v19, %v922_v16  ;;  %v421_v27 = vmul.f32 %v664_v20, %v882_v31  ;;  %v388_v10 = vadd.f32 %v922_v16, %v853_v18 }
 0x169   : > { %671 = vrcp.f32 %v414_v15  ;;  %v348_v23 = vadd.f32 %v347_v17, %v346_v11 }
 0x16a   : > { %v423_v25 = vmax.f32 %v422_v21, -20.723267  ;;  %v430_v34 = vadd.f32 %v421_v27, %v345_v22 }
 0x16b   : > { %v349_v26 = vmul.f32 %v348_v23, %v345_v22 }
 0x16c   : > { %v424_v29 = vadd.f32 %v423_v25, %v422_v21  ;;  %v431_v32 = vadd.f32 %v423_v25, %v347_v17 }
 0x16d   : > { %v350_v30 = vsel %vm300_vm0, %v349_v26, 0.0 }
 0x16e   : > { %351 = vadd.xlane.f32.xlu0 %v350_v30  ;;  %v425_v33 = vmul.f32 %v424_v29, %v421_v27  ;;  %v450_v37 = vmul.f32 %v431_v32, %v430_v34 }
 0x170   : > { %v426_v35 = vsel %vm300_vm0, %v425_v33, 0.0  ;;  %v451_v43 = vsel %vm300_vm0, %v450_v37, 0.0 }
 0x171   : > { %v666_v36 = vpop.eup %665 }
 0x172   : > { %v340_v38 = vmul.f32 0.6931472, %v666_v36  ;;  %427 = vadd.xlane.f32.xlu0 %v426_v35  ;;  %v668_v39 = vpop.eup %667 }
 0x173   : > { %v357_v46 = vmul.f32 %v668_v39, %v652_v63  ;;  %v359_v56 = vmul.f32 %v668_v39, %v911_v58 }
 0x174   : > { %v341_v41 = vadd.f32 %v340_v38, %v899_v40 }
 0x175   : > { %v670_v42 = vpop.eup %669  ;;  %v358_v53 = vmul.f32 %v876_v28, %v357_v46 }
 0x176   : > { %v672_v44 = vpop.eup %671  ;;  %v416_v45 = vmul.f32 0.6931472, %v670_v42  ;;  %452 = vadd.xlane.f32.xlu0 %v451_v43  ;;  %v361_v48 = vsub.f32 %v846_v13, %v341_v41  ;;  %v363_v51 = vsub.f32 0.0, %v341_v41 }
 0x177   : > { %v433_v52 = vmul.f32 %v672_v44, %v658_v5  ;;  %v435_v61 = vmul.f32 %v672_v44, %v654_v2 }
 0x178   : > { %v417_v49 = vadd.f32 %v416_v45, %v905_v47  ;;  %v362_v50 = vadd.f32 %v361_v48, %v850_v14  ;;  %v360_v14 = vsel %vm865_vm5, %v358_v53, %v359_v56 }
 0x179   : > { %v434_v57 = vmul.f32 %v882_v31, %v433_v52 }
 0x17a   : > { %v364_v40 = vsel %vm865_vm5, %v362_v50, %v363_v51  ;;  %v437_v54 = vsub.f32 %v853_v18, %v417_v49  ;;  %v439_v60 = vsub.f32 0.0, %v417_v49 }
 0x17b   : > { %v365_v55 = vmax.f32 %v364_v40, -20.723267  ;;  %v436_v0 = vsel %vm865_vm5, %v434_v57, %v435_v61 }
 0x17c   : > { %v438_v59 = vadd.f32 %v437_v54, %v857_v19  ;;  %v448_v3 = vadd.f32 %v436_v0, %v360_v14 }
 0x17d   : > { %v366_v47 = vadd.f32 %v365_v55, %v364_v40 }
 0x17e   : > { %v440_v28 = vsel %vm865_vm5, %v438_v59, %v439_v60 }
 0x17f   : > { %v367_v62 = vmul.f32 %v366_v47, %v360_v14  ;;  %v441_v63 = vmax.f32 %v440_v28, -20.723267 }
 0x181   : > { %v368_v58 = vsel %vm300_vm0, %v367_v62, 0.0  ;;  %v442_v1 = vadd.f32 %v441_v63, %v440_v28  ;;  %v449_v31 = vadd.f32 %v441_v63, %v365_v55 }
 0x182   : > { %369 = vadd.xlane.f32.xlu0 %v368_v58 }
 0x183   : > { %v443_v19 = vmul.f32 %v442_v1, %v436_v0  ;;  %v454_v5 = vmul.f32 %v449_v31, %v448_v3 }
 0x185   : > { %v444_v4 = vsel %vm300_vm0, %v443_v19, 0.0  ;;  %v455_v2 = vsel %vm300_vm0, %v454_v5, 0.0 }
 0x186   : > { %445 = vadd.xlane.f32.xlu0 %v444_v4 }
 0x18a   : > { %456 = vadd.xlane.f32.xlu0 %v455_v2 }
 0x1e8   : > { %v392_v8 = vpop.xlane.xlu0 %391  ;;  %v316_v24 = vpop.xlane.xlu1 %315 }
 0x1e9   : > { %v317_v7 = vsub.f32 %v312_v6, %v316_v24  ;;  %v342_v11 = vsub.f32 %v341_v41, %v316_v24  ;;  %v393_v12 = vsub.f32 %v388_v10, %v392_v8  ;;  %v418_v29 = vsub.f32 %v417_v49, %v392_v8 }
 0x1eb   : > { %v343_v15 = vadd.f32 %v342_v11, %v317_v7 }
 0x1ed   : > { %v394_v17 = vadd.f32 %v393_v12, %v343_v15 }
 0x1ef   : > { %v419_v32 = vadd.f32 %v418_v29, %v394_v17 }
 0x1f7   : > { %v352_v20 = vpop.xlane.xlu0 %351 }
 0x1fb   : > { %v428_v21 = vpop.xlane.xlu0 %427 }
 0x1fc   : > { %v429_v25 = vadd.f32 %v428_v21, %v352_v20 }
 0x1ff   : > { %v453_v22 = vpop.xlane.xlu0 %452 }
 0x200   : > { %v458_v26 = vsub.f32 %v429_v25, %v453_v22 }
 0x202   : > { %v459_v30 = vmul.f32 0.6, %v458_v26 }
 0x204   : > { %v460_v18 = vadd.f32 %v459_v30, %v419_v32 }
 0x20b   : > { %v370_v23 = vpop.xlane.xlu0 %369 }
 0x20f   : > { %v446_v27 = vpop.xlane.xlu0 %445 }
 0x210   : > { %v447_v13 = vadd.f32 %v446_v27, %v370_v23 }
 0x213   : > { %v457_v9 = vpop.xlane.xlu0 %456 }
 0x214   : > { %v461_v33 = vsub.f32 %v447_v13, %v457_v9 }
 0x216   : > { %v462_v16 = vmul.f32 0.6, %v461_v33 }
 0x218   : > { %v463_v34 = vadd.f32 %v462_v16, %v460_v18 }
 0x21a   : > { %v465_v35 = vsel %vm464_vm7, %v463_v34, 0.0 }
 0x21b   : > { %466 = vadd.xlane.f32.xlu0 %v465_v35 }
 0x2a4   : > { %v467_v36 = vpop.xlane.xlu0 %466 }
 0x2a5   : > { %v468_v37 = vrot.slane %v467_v36, 4 }
 0x2a7   : > { %v469_v38 = vadd.f32 %v468_v37, %v467_v36 }
 0x2a9   : > { %v470_v39 = vrot.slane %v469_v38, 2 }
 0x2ab   : > { %v471_v41 = vadd.f32 %v470_v39, %v469_v38 }
 0x2ad   : > { %v472_v42 = vrot.slane %v471_v41, 1 }
 0x2af   : > { %v473_v43 = vadd.f32 %v472_v42, %v471_v41 }
 0x2b1   : > { %596 = vpush %v473_v43 }
 0x2e2   : > { %s597_s9 = spop %596 }
 0x2e3   : > { %v475_v44 = vstv %s597_s9 }
 0x2e4   : > { %476 = vst [vmem:[%s260_s5] sm:$0xff] %v475_v44 }
 0x2e5   : > { %686 = shalt.err (!%p683_p7)
}
 0x2e6   : > { %s687_s23 = scalar_lea.hbm %s489_s12, 128  ;;  %s691_s28 = scalar_lea.hbm %s1001_s4, 256 }
 0x2e7   : > { %p688_p10 = scmp.ne.s32.totalorder %s489_s12, %s687_s23  ;;  %p692_p13 = scmp.lt.s32.totalorder %s489_s12, %s1001_s4 }
 0x2e8   : > { %p693_p0 = scmp.lt.s32.totalorder %s691_s28, %s687_s23 }
 0x2e9   : > { %p689_p11 = pnand %p688_p10, %p803_p6 }
 0x2ea   : > { %p694_p1 = por %p693_p0, %p692_p13 }
 0x2eb   : > { %p690_p12 = pneg %p689_p11 }
 0x2ed   : > { %p695_p9 = pnand %p694_p1, %p690_p12 }
 0x2ef   : > { %698 = shalt.err (!%p695_p9)
}
 0x2f0   : > { %598 = dma.vmem_to_hbm [thread:$0]  (%p803_p6), %s957_s6, 128, %s489_s12, %s478_s13  }
 0x2f1 PF: > { %s503_s5 = sand.u32 1, %s721_s15   ;;  %p1007_p2 = scmp.ge.s32.totalorder %s733_s18, 2 }
 0x2f2   : > { %s504_s7 = scalar_lea.sflag [#allocation4], %s503_s5 }
 0x2f3   : > { %p601_p3 = pnand %p1007_p2, %p807_p8 }
 0x2f5   : > { %p602_p4 = pneg %p601_p3 }
 0x2f7   : > { %716 = dma.done.wait (%p602_p4), %s504_s7, 128  }
 0x2f8   : > { %718 = vsyncadd (%p602_p4), %s504_s7, 4294967168  ;;  %p14_p9 = scmp.ge.s32.totalorder %s789_s21, 4   ;;  %s1008_s15 = smov %s725_s16 }
 0x2f9   : > { %s1009_s16 = smov %s729_s17  ;;  %s1010_s17 = smov %s801_s24 }
 0x2fa   : > { %s1011_s18 = smov %s789_s21  ;;  %16 = sbr.rel (!%p14_p9) target bundleno = 3 (0x3), region = 121 }
 0x2ff   :  { %509 = vsyncpa [#allocation4], 1 }
 0x300   :  { %511 = vsyncpa [#allocation4 + $0x1], 1 }

</bundles_post_ra>
